<compile_context>
chip_gen: v6e
topology: v6e:2x2x1
jax: 0.10.0
libtpu: 0.0.40
codegen_flags: <defaults>
</compile_context>

<pallas_src>
import math
import functools

import jax
import jax.numpy as jnp
from jax.experimental import pallas as pl
from jax.experimental.pallas import tpu as pltpu


def make_positional_encoding(d_model: int, max_len: int) -> jnp.ndarray:
    """Deterministic parameter setup identical to the PyTorch __init__."""
    position = jnp.arange(max_len, dtype=jnp.float32)[:, None]            # (L, 1)
    div_term = jnp.exp(
        jnp.arange(0, d_model, 2, dtype=jnp.float32) * (-math.log(10000.0) / d_model)
    )                                                                      # (D/2,)
    pe = jnp.zeros((max_len, d_model), dtype=jnp.float32)
    pe = pe.at[:, 0::2].set(jnp.sin(position * div_term))
    pe = pe.at[:, 1::2].set(jnp.cos(position * div_term))
    return pe[None, :, :]                                                  # (1, L, D)


def _hash_u32(x):
    # "lowbias32"-style integer mixer: good avalanche on sequential counters.
    # Pure VALU ops -> portable (TPU + interpret) and essentially free in a
    # memory-bound kernel.
    x = x ^ (x >> 16)
    x = x * jnp.uint32(0x7FEB352D)
    x = x ^ (x >> 15)
    x = x * jnp.uint32(0x846CA68B)
    x = x ^ (x >> 16)
    return x


def _pe_dropout_kernel(seed_ref, x_ref, pe_ref, o_ref, *,
                       p: float, training: bool,
                       L: int, D: int, TB: int, TL: int):
    # Broadcast add of the positional encoding over the batch sub-block.
    # x block: (TB, TL, D); pe block: (1, TL, D) -> jnp broadcasts over axis 0.
    y = x_ref[...].astype(jnp.float32) + pe_ref[...].astype(jnp.float32)

    if training and p > 0.0:
        # Counter-based dropout mask keyed off the GLOBAL element index so the
        # mask is independent of the tiling and never repeats across tiles.
        shape = y.shape                                     # (TB, TL, D)
        l0 = pl.program_id(0) * TL                          # grid = (nL, nB)
        b0 = pl.program_id(1) * TB
        b_idx = jax.lax.broadcasted_iota(jnp.int32, shape, 0) + b0
        l_idx = jax.lax.broadcasted_iota(jnp.int32, shape, 1) + l0
        d_idx = jax.lax.broadcasted_iota(jnp.int32, shape, 2)
        flat = (b_idx * L + l_idx) * D + d_idx
        seed_u = seed_ref[0].astype(jnp.uint32)
        bits = _hash_u32(flat.astype(jnp.uint32) + seed_u * jnp.uint32(0x9E3779B9))
        # Integer threshold compare: keep with probability 1 - p.
        threshold = jnp.uint32(min(int(round(p * 2.0 ** 32)), 2 ** 32 - 1))
        keep = bits >= threshold
        y = jnp.where(keep, y * jnp.float32(1.0 / (1.0 - p)), jnp.zeros_like(y))

    o_ref[...] = y.astype(o_ref.dtype)


def positional_encoding_forward(x, pe, *, p=0.1, training=True, seed=0,
                                target_tile_bytes=2 * 1024 * 1024):
    """x: (B, L, D) float32; pe: (1, L, D) float32."""
    B, L, D = x.shape
    assert pe.shape == (1, L, D), "x seq/feature dims must match pe (PyTorch broadcast)"

    # Tile sizing: biggest lane-dense tile (full D) around ~2 MiB.
    itemsize = 4
    row_bytes = L * D * itemsize
    if row_bytes <= target_tile_bytes:
        TL = L                                              # whole sequence resident
        TB = max(1, min(B, target_tile_bytes // row_bytes)) # merge batch rows
    else:
        TB = 1
        if L <= 8:
            TL = L
        else:
            TL = max(8, min(L, (target_tile_bytes // (D * itemsize)) // 8 * 8))

    nB = pl.cdiv(B, TB)
    nL = pl.cdiv(L, TL)
    # Grid order (nL, nB): pe's block index is constant along the inner (batch)
    # axis, so Pallas keeps it resident and does not re-DMA it per batch tile.
    grid = (nL, nB)

    kernel = functools.partial(
        _pe_dropout_kernel,
        p=float(p), training=bool(training), L=L, D=D, TB=TB, TL=TL)

    grid_spec = pltpu.PrefetchScalarGridSpec(
        num_scalar_prefetch=1,                               # seed lives in SMEM
        grid=grid,
        in_specs=[
            pl.BlockSpec((TB, TL, D), lambda li, bi, seed_ref: (bi, li, 0)),  # x tile
            pl.BlockSpec((1, TL, D), lambda li, bi, seed_ref: (0, li, 0)),    # shared pe
        ],
        out_specs=pl.BlockSpec((TB, TL, D), lambda li, bi, seed_ref: (bi, li, 0)),
    )

    return pl.pallas_call(
        kernel,
        grid_spec=grid_spec,
        out_shape=jax.ShapeDtypeStruct(x.shape, x.dtype),
        compiler_params=pltpu.CompilerParams(
            dimension_semantics=("parallel", "parallel"),   # fully independent tiles
            vmem_limit_bytes=32 * 1024 * 1024,
        ),
    )(jnp.asarray([seed], dtype=jnp.int32), x, pe)


if __name__ == "__main__":
    # Small shapes consistent with the module: d_model=32, max_len=8, batch=2.
    B, L, D = 2, 8, 32
    key = jax.random.PRNGKey(0)
    x = jax.random.normal(key, (B, L, D), dtype=jnp.float32)
    pe = make_positional_encoding(d_model=D, max_len=L)

    ref = x + pe

    # Eval-mode path (dropout is identity) — exact check against x + pe.
    y_eval = jax.block_until_ready(
        positional_encoding_forward(x, pe, p=0.1, training=False))
    assert jnp.allclose(y_eval, ref, atol=1e-6, rtol=1e-6), "eval path mismatch"

    # Training-mode path with in-kernel dropout.
    # TODO(synk): dropout mask bit-pattern differs from torch's RNG stream —
    # only the Bernoulli(keep = 1-p) distribution and 1/(1-p) scaling match.
    p = 0.1
    y_train = jax.block_until_ready(
        positional_encoding_forward(x, pe, p=p, training=True, seed=1234))
    assert y_train.shape == (B, L, D)
    scaled = ref / (1.0 - p)
    elem_ok = jnp.isclose(y_train, 0.0, atol=1e-6) | jnp.isclose(
        y_train, scaled, atol=1e-5, rtol=1e-5)
    assert bool(jnp.all(elem_ok)), "train values are not in {0, (x+pe)/(1-p)}"
    keep_rate = float(jnp.mean((y_train != 0.0).astype(jnp.float32)))
    assert 0.6 <= keep_rate <= 1.0, f"unexpected dropout keep rate {keep_rate}"

    print("KERNEL_OK")
</pallas_src>

<mosaic_0001>
module attributes {stable_mosaic.version = 11 : i64} {
  func.func @_pe_dropout_kernel(%arg0: i32, %arg1: i32, %arg2: memref<1xi32, #tpu.memory_space<smem>>, %arg3: memref<2x8x32xf32, #tpu.memory_space<vmem>>, %arg4: memref<1x8x32xf32, #tpu.memory_space<vmem>>, %arg5: memref<2x8x32xf32, #tpu.memory_space<vmem>>) attributes {dimension_semantics = [#tpu.dimension_semantics<parallel>, #tpu.dimension_semantics<parallel>], iteration_bounds = array<i64: 1, 1>, scalar_prefetch = 1 : i64, scratch_operands = 0 : i64, tpu.core_type = #tpu.core_type<tc>, window_params = [{transform_indices = @transform_0, window_bounds = array<i64: 2, 8, 32>}, {transform_indices = @transform_1, window_bounds = array<i64: 1, 8, 32>}, {transform_indices = @transform_2, window_bounds = array<i64: 2, 8, 32>}]} {
    %c0 = arith.constant 0 : index
    %c0_0 = arith.constant 0 : index
    %c0_1 = arith.constant 0 : index
    %0 = vector.load %arg3[%c0, %c0_0, %c0_1] : memref<2x8x32xf32, #tpu.memory_space<vmem>>, vector<2x8x32xf32>
    %c0_2 = arith.constant 0 : index
    %c0_3 = arith.constant 0 : index
    %c0_4 = arith.constant 0 : index
    %1 = vector.load %arg4[%c0_2, %c0_3, %c0_4] : memref<1x8x32xf32, #tpu.memory_space<vmem>>, vector<1x8x32xf32>
    %2 = vector.broadcast %1 : vector<1x8x32xf32> to vector<2x8x32xf32>
    %3 = arith.addf %0, %2 : vector<2x8x32xf32>
    %c0_5 = arith.constant 0 : index
    %c0_6 = arith.constant 0 : index
    %c0_7 = arith.constant 0 : index
    %4 = vector.load %arg5[%c0_5, %c0_6, %c0_7] : memref<2x8x32xf32, #tpu.memory_space<vmem>>, vector<2x8x32xf32>
    tpu.vector_store %arg5[%c0_5, %c0_6, %c0_7], %3 {strides = array<i32>} : memref<2x8x32xf32, #tpu.memory_space<vmem>>, vector<2x8x32xf32>,
    return
  }
  func.func @transform_0(%arg0: i32, %arg1: i32, %arg2: memref<1xi32, #tpu.memory_space<smem>>) -> (i32, i32, i32) {
    %c0_i32 = arith.constant 0 : i32
    %c0_i32_0 = arith.constant 0 : i32
    return %arg1, %arg0, %c0_i32 : i32, i32, i32
  }
  func.func @transform_1(%arg0: i32, %arg1: i32, %arg2: memref<1xi32, #tpu.memory_space<smem>>) -> (i32, i32, i32) {
    %c0_i32 = arith.constant 0 : i32
    %c0_i32_0 = arith.constant 0 : i32
    %c0_i32_1 = arith.constant 0 : i32
    return %c0_i32, %arg0, %c0_i32_0 : i32, i32, i32
  }
  func.func @transform_2(%arg0: i32, %arg1: i32, %arg2: memref<1xi32, #tpu.memory_space<smem>>) -> (i32, i32, i32) {
    %c0_i32 = arith.constant 0 : i32
    %c0_i32_0 = arith.constant 0 : i32
    return %arg1, %arg0, %c0_i32 : i32, i32, i32
  }
}

</mosaic_0001>

<bundles_post_ra>
// kernel: tpu_custom_call.1
= control target key start
LH: loop header
LB: loop body
LE: loop exit
PB: predicated region body
PF: predicated region fallthrough
CT: control target
= control target key end

     0   :  { %9 = vsyncpa [#allocation5], 0  ;;  %s177_s0 = inlined_call_operand.<no memory space> [shape: s32[1], index: 0, kind: input, shape index: {}]   ;;  %s178_s1 = inlined_call_operand.hbm [shape: f32[2,8,32], index: 1, kind: input, shape index: {}]   ;;  %s179_s2 = inlined_call_operand.hbm [shape: f32[1,8,32], index: 2, kind: input, shape index: {}]   ;;  %s180_s3 = inlined_call_operand.hbm [shape: f32[2,8,32], index: 3, kind: output, shape index: {}]  }
   0x1   :  { %10 = vsyncpa [#allocation8], 0 }
   0x2   :  { %11 = vsyncpa [#allocation6], 0  ;;  %s137_s12 = smov [#allocation4]  }
   0x3   :  { %s17_s13 = sshll.u32 %s137_s12, 4  ;;  %s18_s13 = int_to_ptr.vmem [resolvable:$true] %s17_s13 }
   0x4   :  { %s79_s14 = scalar_lea.vmem %s18_s13, 256  ;;  %p84_p1 = scmp.lt.s32.totalorder %s18_s13, %s18_s13 }
   0x5   :  { %p80_p0 = scmp.ne.s32.totalorder %s18_s13, %s79_s14  ;;  %p85_p2 = scmp.lt.s32.totalorder %s79_s14, %s79_s14 }
   0x7   :  { %p86_p3 = por %p85_p2, %p84_p1 }
   0x9   :  { %p87_p4 = pnand %p86_p3, %p80_p0 }
   0xb   :  { %90 = shalt.err (!%p87_p4)
}
   0xc   :  { %s138_s0 = smov 128   ;;  %s139_s15 = smov 8  }
   0xd   :  { %23 = dma.hbm_to_vmem [thread:$0]  %s178_s1, 256, %s18_s13, [#allocation5], %s138_s0, %s138_s0, %s139_s15  }
   0xe   :  { %s140_s18 = smov [#allocation7]  }
   0xf   :  { %s30_s19 = sshll.u32 %s140_s18, 4  ;;  %s31_s19 = int_to_ptr.vmem [resolvable:$true] %s30_s19 }
  0x10   :  { %s99_s20 = scalar_lea.vmem %s31_s19, 128  ;;  %p104_p6 = scmp.lt.s32.totalorder %s31_s19, %s31_s19 }
  0x11   :  { %p100_p5 = scmp.ne.s32.totalorder %s31_s19, %s99_s20  ;;  %p105_p7 = scmp.lt.s32.totalorder %s99_s20, %s99_s20 }
  0x13   :  { %p106_p8 = por %p105_p7, %p104_p6 }
  0x15   :  { %p107_p9 = pnand %p106_p8, %p100_p5 }
  0x17   :  { %110 = shalt.err (!%p107_p9)
}
  0x18   :  { %33 = dma.hbm_to_vmem [thread:$0]  %s179_s2, 128, %s31_s19, [#allocation8]  }
  0x19   :  { %131 = dma.done.wait [#allocation5], 256  }
  0x1a   :  { %132 = vsyncadd [#allocation5], 4294967040 }
  0x1b   :  { %133 = dma.done.wait [#allocation8], 128  }
  0x1c   :  { %134 = vsyncadd [#allocation8], 4294967168  ;;  %s141_s23 = smov [#allocation9]   ;;  %v40_v0 = vld [vmem:[#allocation4] sm:$0xff]  ;;  %v42_v1 = vld [vmem:[#allocation7] sm:$0xff]  ;;  %vm45_vm0 = vcmask 261120  }
  0x1d   :  { %s53_s1 = sshll.u32 %s141_s23, 4  ;;  %v41_v2 = vld [vmem:[#allocation4 + $0x8] sm:$0xff]  ;;  %v43_v3 = vadd.f32 %v42_v1, %v40_v0  ;;  %s54_s1 = int_to_ptr.vmem [resolvable:$true] %s53_s1 }
  0x1e   :  { %v44_v4 = vadd.f32 %v42_v1, %v41_v2  ;;  %s111_s24 = scalar_lea.vmem %s54_s1, 256  ;;  %p116_p11 = scmp.lt.s32.totalorder %s54_s1, %s54_s1 }
  0x1f   :  { %46 = vst.msk [vmem:[#allocation9] sm:$0xff] %vm45_vm0, %v43_v3  ;;  %p112_p10 = scmp.ne.s32.totalorder %s54_s1, %s111_s24  ;;  %p117_p12 = scmp.lt.s32.totalorder %s111_s24, %s111_s24 }
  0x20   :  { %47 = vst.msk [vmem:[#allocation9 + $0x8] sm:$0xff] %vm45_vm0, %v44_v4 }
  0x21   :  { %p118_p13 = por %p117_p12, %p116_p11 }
  0x23   :  { %p119_p0 = pnand %p118_p13, %p112_p10 }
  0x25   :  { %122 = shalt.err (!%p119_p0)
}
  0x26   :  { %59 = dma.vmem_to_hbm [thread:$0]  %s54_s1, 256, %s180_s3, [#allocation6], %s138_s0, %s138_s0, %s139_s15  }
  0x27   :  { %135 = dma.done.wait [#allocation6], 256  }
  0x28   :  { %136 = vsyncadd [#allocation6], 4294967040 }
  0x29   :  { %63 = vsyncpa [#allocation5], 1 }
  0x2a   :  { %64 = vsyncpa [#allocation8], 1 }
  0x2b   :  { %65 = vsyncpa [#allocation6], 1 }

</bundles_post_ra>
